<compile_context>
chip_gen: v7x
topology: tpu7x:2x2x1
jax: 0.10.0
libtpu: 0.0.40
codegen_flags: <defaults>
</compile_context>

<pallas_src>
import jax
import jax.numpy as jnp
from jax import lax
from jax.experimental import pallas as pl
from jax.experimental.pallas import tpu as pltpu

# (in_features, out_features) per layer, as in the PyTorch module.
LAYER_DIMS = [(3, 6), (6, 8), (8, 8), (8, 6), (6, 4)]
N_LAYERS = len(LAYER_DIMS)
IN0 = LAYER_DIMS[0][0]          # 3  real input features
OUT_DIM = LAYER_DIMS[-1][1]     # 4  real output features
FEAT_PAD = 8                    # every hidden width padded to 8 sublane rows

SUB = 128                       # in-kernel lane sub-tile (one vreg of lanes)
BIAS_COLS = SUB                 # bias pre-splatted across a full 128-lane panel
W_OFF = BIAS_COLS               # weight columns start at a lane-block boundary
SLAB_COLS = BIAS_COLS + FEAT_PAD  # [bias panel (128) | weight cols (8)] = 136

TB = 1024                       # default batch tile (lanes); sweep 1024/1536/2048


def mlp_kernel(x_ref, slab_ref, o_ref):
    """x_ref: (IN0, tb); slab_ref: (N_LAYERS, FEAT_PAD, SLAB_COLS) f32; o_ref: (OUT_DIM, tb)."""
    # Hoist the tiny resident weights / pre-splatted bias panels out of the
    # per-sub-tile loop: done once per grid step, off the layer-dependency chain.
    ws, bs = [], []
    for l in range(N_LAYERS):
        wb = slab_ref[l]                                   # (8, 136)
        in_d = LAYER_DIMS[l][0] if l == 0 else FEAT_PAD    # layer 0 uses only 3 weight cols
        ws.append(wb[:, W_OFF:W_OFF + in_d])               # (8, in_d), lane-block aligned
        bs.append(wb[:, 0:BIAS_COLS])                      # (8, 128),  lane-block aligned

    n_sub = x_ref.shape[-1] // SUB                         # static trip count

    def body(j, carry):
        off = pl.multiple_of(j * SUB, SUB)
        h = x_ref[:, pl.ds(off, SUB)].astype(jnp.float32)  # (3, 128), f32 math on all gens
        # Hidden layers with ReLU; zero-padded weight rows/cols keep pad rows at 0.
        for l in range(N_LAYERS - 1):
            h = jnp.maximum(
                jnp.dot(ws[l], h, preferred_element_type=jnp.float32) + bs[l], 0.0)
        # Output layer: no activation; only the first OUT_DIM rows are real.
        out = jnp.dot(ws[-1], h, preferred_element_type=jnp.float32) + bs[-1]   # (8, 128)
        o_ref[:, pl.ds(off, SUB)] = out[0:OUT_DIM, :].astype(o_ref.dtype)
        return carry

    # Unrolled: independent 128-lane chains interleave on the MXU/VPU, hiding the
    # serial layer-to-layer latency while the live set stays a few vregs (no spills
    # even at TB=2048).
    lax.fori_loop(0, n_sub, body, 0, unroll=True)


def pack_params(params):
    """params: list of (W [out,in] PyTorch layout, b [out]) -> (5, 8, 136) f32 slab.

    Columns 0:128 hold the bias replicated across a full lane block; columns
    128:136 hold the zero-padded weight matrix.  Both slices are lane-block
    aligned so the in-kernel views are free."""
    slab = jnp.zeros((N_LAYERS, FEAT_PAD, SLAB_COLS), jnp.float32)
    for l, (w, b) in enumerate(params):
        out_d, in_d = w.shape
        slab = slab.at[l, :out_d, W_OFF:W_OFF + in_d].set(w)
        slab = slab.at[l, :out_d, 0:BIAS_COLS].set(
            jnp.broadcast_to(b[:, None], (out_d, BIAS_COLS)))
    return slab


def evolate_forward_fb(x_fb, slab, *, tb=TB, out_dtype=None):
    """Primary (features-major) entry point: x_fb [3, B] -> out [4, B].

    Keeps the [features, batch] layout end-to-end: no wrapper transposes, so the
    only HBM traffic is the kernel's lane-dense streams of x and out."""
    f_in, B = x_fb.shape
    assert f_in == IN0, f_in
    out_dtype = out_dtype if out_dtype is not None else x_fb.dtype

    # Clamp the tile so tiny batches don't over-pad; keep it a multiple of 128.
    tb = max(SUB, min(tb, pl.cdiv(B, SUB) * SUB))
    assert tb % SUB == 0
    Bp = pl.cdiv(B, tb) * tb
    if Bp != B:
        # TODO(synk): handle the ragged tail with a smaller last block instead of a pad copy.
        x_fb = jnp.pad(x_fb, ((0, 0), (0, Bp - B)))

    flops = 2 * 202 * Bp                          # 202 MACs per batch element
    bytes_accessed = (Bp * IN0 * jnp.dtype(x_fb.dtype).itemsize
                      + Bp * OUT_DIM * jnp.dtype(out_dtype).itemsize
                      + slab.size * 4)

    out_fb = pl.pallas_call(
        mlp_kernel,
        out_shape=jax.ShapeDtypeStruct((OUT_DIM, Bp), out_dtype),
        grid=(Bp // tb,),                          # v7x: keep Bp//tb >= 2 (even) to feed both TCs
        in_specs=[
            pl.BlockSpec((IN0, tb), lambda i: (0, i)),          # batch-tiled, lane-dense input
            pl.BlockSpec(slab.shape, lambda i: (0, 0, 0)),      # resident weight/bias slab
        ],
        out_specs=pl.BlockSpec((OUT_DIM, tb), lambda i: (0, i)),  # lane-dense output
        compiler_params=pltpu.CompilerParams(
            dimension_semantics=("parallel",)),
        cost_estimate=pl.CostEstimate(
            flops=flops, transcendentals=0, bytes_accessed=bytes_accessed),
    )(x_fb, slab)

    return out_fb[:, :B]


def evolate_forward(x, slab, *, tb=TB, out_dtype=None):
    """Module-layout compat wrapper: x [B, 3] -> [B, 4].
    Prefer evolate_forward_fb when the surrounding graph can keep the
    [features, batch] layout; these transposes re-touch x/out in HBM."""
    return evolate_forward_fb(x.T, slab, tb=tb, out_dtype=out_dtype).T


def init_params(key):
    """Deterministic init mimicking nn.Linear default (uniform +/- 1/sqrt(fan_in)).
    Weights kept in PyTorch's native [out, in] layout; biases are [out]."""
    params = []
    for (fan_in, fan_out) in LAYER_DIMS:
        key, kw, kb = jax.random.split(key, 3)
        bound = 1.0 / jnp.sqrt(float(fan_in))
        w = jax.random.uniform(kw, (fan_out, fan_in), jnp.float32, -bound, bound)
        b = jax.random.uniform(kb, (fan_out,), jnp.float32, -bound, bound)
        params.append((w, b))
    return params


def reference_forward(x, params):
    """Pure-JAX reference matching the PyTorch forward. x: [B, 3] -> [B, 4]."""
    h = x
    for i, (w, b) in enumerate(params):
        h = h @ w.T + b
        if i < len(params) - 1:
            h = jnp.maximum(h, 0.0)
    return h


if __name__ == "__main__":
    key = jax.random.PRNGKey(0)
    kx, kp = jax.random.split(key)

    B = 2048  # two 1024-wide batch tiles -> 2-step grid (both v7x TensorCores busy)
    x_fb = jax.random.normal(kx, (IN0, B), dtype=jnp.float32)  # features-major, no wrapper transpose
    params = init_params(kp)
    slab = pack_params(params)

    ref = reference_forward(x_fb.T, params)                    # [B, 4]

    # f32 I/O path (features-major end-to-end).
    out_fb = jax.block_until_ready(evolate_forward_fb(x_fb, slab))
    assert out_fb.shape == (OUT_DIM, B), out_fb.shape
    assert jnp.allclose(out_fb.T, ref, atol=1e-4, rtol=1e-4), "mismatch vs JAX reference (f32)"

    # bf16 I/O variant: halves streamed HBM bytes; math stays f32 in-kernel.
    x_bf = x_fb.astype(jnp.bfloat16)
    ref_bf = reference_forward(x_bf.astype(jnp.float32).T, params)
    out_bf = jax.block_until_ready(
        evolate_forward_fb(x_bf, slab, out_dtype=jnp.bfloat16))
    assert jnp.allclose(out_bf.astype(jnp.float32).T, ref_bf, atol=3e-2, rtol=3e-2), \
        "mismatch vs JAX reference (bf16 I/O)"

    # Module-layout compat path ([B,3] -> [B,4]).
    out_bt = jax.block_until_ready(evolate_forward(x_fb.T, slab))
    assert out_bt.shape == (B, OUT_DIM), out_bt.shape
    assert jnp.allclose(out_bt, ref, atol=1e-4, rtol=1e-4), "mismatch vs JAX reference (compat)"

    print("KERNEL_OK")
</pallas_src>

<mosaic_0001>
module attributes {stable_mosaic.version = 11 : i64} {
  func.func @mlp_kernel(%arg0: i32, %arg1: memref<3x1024xf32, #tpu.memory_space<vmem>>, %arg2: memref<5x8x136xf32, #tpu.memory_space<vmem>>, %arg3: memref<4x1024xf32, #tpu.memory_space<vmem>>) attributes {dimension_semantics = [#tpu.dimension_semantics<parallel>], iteration_bounds = array<i64: 2>, scalar_prefetch = 0 : i64, scratch_operands = 0 : i64, tpu.core_type = #tpu.core_type<tc>, window_params = [{transform_indices = @transform_0, window_bounds = array<i64: 3, 1024>}, {pipeline_mode = #tpu.pipeline_mode<synchronous>, transform_indices = @transform_1, window_bounds = array<i64: 5, 8, 136>}, {transform_indices = @transform_2, window_bounds = array<i64: 4, 1024>}]} {
    %c0 = arith.constant 0 : index
    %c0_0 = arith.constant 0 : index
    %c0_1 = arith.constant 0 : index
    %0 = vector.load %arg2[%c0, %c0_0, %c0_1] : memref<5x8x136xf32, #tpu.memory_space<vmem>>, vector<1x8x136xf32>
    %1 = vector.shape_cast %0 : vector<1x8x136xf32> to vector<8x136xf32>
    %2 = vector.extract_strided_slice %1 {offsets = [0, 128], sizes = [8, 3], strides = [1, 1]} : vector<8x136xf32> to vector<8x3xf32>
    %3 = vector.extract_strided_slice %1 {offsets = [0, 0], sizes = [8, 128], strides = [1, 1]} : vector<8x136xf32> to vector<8x128xf32>
    %c1 = arith.constant 1 : index
    %c0_2 = arith.constant 0 : index
    %c0_3 = arith.constant 0 : index
    %4 = vector.load %arg2[%c1, %c0_2, %c0_3] : memref<5x8x136xf32, #tpu.memory_space<vmem>>, vector<1x8x136xf32>
    %5 = vector.shape_cast %4 : vector<1x8x136xf32> to vector<8x136xf32>
    %6 = vector.extract_strided_slice %5 {offsets = [0, 128], sizes = [8, 8], strides = [1, 1]} : vector<8x136xf32> to vector<8x8xf32>
    %7 = vector.extract_strided_slice %5 {offsets = [0, 0], sizes = [8, 128], strides = [1, 1]} : vector<8x136xf32> to vector<8x128xf32>
    %c2 = arith.constant 2 : index
    %c0_4 = arith.constant 0 : index
    %c0_5 = arith.constant 0 : index
    %8 = vector.load %arg2[%c2, %c0_4, %c0_5] : memref<5x8x136xf32, #tpu.memory_space<vmem>>, vector<1x8x136xf32>
    %9 = vector.shape_cast %8 : vector<1x8x136xf32> to vector<8x136xf32>
    %10 = vector.extract_strided_slice %9 {offsets = [0, 128], sizes = [8, 8], strides = [1, 1]} : vector<8x136xf32> to vector<8x8xf32>
    %11 = vector.extract_strided_slice %9 {offsets = [0, 0], sizes = [8, 128], strides = [1, 1]} : vector<8x136xf32> to vector<8x128xf32>
    %c3 = arith.constant 3 : index
    %c0_6 = arith.constant 0 : index
    %c0_7 = arith.constant 0 : index
    %12 = vector.load %arg2[%c3, %c0_6, %c0_7] : memref<5x8x136xf32, #tpu.memory_space<vmem>>, vector<1x8x136xf32>
    %13 = vector.shape_cast %12 : vector<1x8x136xf32> to vector<8x136xf32>
    %14 = vector.extract_strided_slice %13 {offsets = [0, 128], sizes = [8, 8], strides = [1, 1]} : vector<8x136xf32> to vector<8x8xf32>
    %15 = vector.extract_strided_slice %13 {offsets = [0, 0], sizes = [8, 128], strides = [1, 1]} : vector<8x136xf32> to vector<8x128xf32>
    %c4 = arith.constant 4 : index
    %c0_8 = arith.constant 0 : index
    %c0_9 = arith.constant 0 : index
    %16 = vector.load %arg2[%c4, %c0_8, %c0_9] : memref<5x8x136xf32, #tpu.memory_space<vmem>>, vector<1x8x136xf32>
    %17 = vector.shape_cast %16 : vector<1x8x136xf32> to vector<8x136xf32>
    %18 = vector.extract_strided_slice %17 {offsets = [0, 128], sizes = [8, 8], strides = [1, 1]} : vector<8x136xf32> to vector<8x8xf32>
    %19 = vector.extract_strided_slice %17 {offsets = [0, 0], sizes = [8, 128], strides = [1, 1]} : vector<8x136xf32> to vector<8x128xf32>
    %c0_i32 = arith.constant 0 : i32
    %c128_i32 = arith.constant 128 : i32
    %20 = arith.muli %c0_i32, %c128_i32 : i32
    %21 = tpu.assume_multiple %20, 128 : i32
    %c0_10 = arith.constant 0 : index
    %22 = arith.index_cast %21 : i32 to index
    %23 = vector.load %arg1[%c0_10, %22] : memref<3x1024xf32, #tpu.memory_space<vmem>>, vector<3x128xf32>
    %cst = arith.constant dense<0.000000e+00> : vector<8x128xf32>
    %24 = tpu.matmul %2, %23, %cst {dimension_numbers = #tpu.dot_dimension_numbers<[1], [0], [0], [1], [0, 0, 1, 1], [], []>} : vector<8x3xf32>, vector<3x128xf32>, vector<8x128xf32> -> vector<8x128xf32>
    %25 = arith.addf %24, %3 : vector<8x128xf32>
    %cst_11 = arith.constant 0.000000e+00 : f32
    %26 = vector.broadcast %cst_11 : f32 to vector<8x128xf32>
    %27 = arith.maximumf %25, %26 : vector<8x128xf32>
    %cst_12 = arith.constant dense<0.000000e+00> : vector<8x128xf32>
    %28 = tpu.matmul %6, %27, %cst_12 {dimension_numbers = #tpu.dot_dimension_numbers<[1], [0], [0], [1], [0, 0, 1, 1], [], []>} : vector<8x8xf32>, vector<8x128xf32>, vector<8x128xf32> -> vector<8x128xf32>
    %29 = arith.addf %28, %7 : vector<8x128xf32>
    %cst_13 = arith.constant 0.000000e+00 : f32
    %30 = vector.broadcast %cst_13 : f32 to vector<8x128xf32>
    %31 = arith.maximumf %29, %30 : vector<8x128xf32>
    %cst_14 = arith.constant dense<0.000000e+00> : vector<8x128xf32>
    %32 = tpu.matmul %10, %31, %cst_14 {dimension_numbers = #tpu.dot_dimension_numbers<[1], [0], [0], [1], [0, 0, 1, 1], [], []>} : vector<8x8xf32>, vector<8x128xf32>, vector<8x128xf32> -> vector<8x128xf32>
    %33 = arith.addf %32, %11 : vector<8x128xf32>
    %cst_15 = arith.constant 0.000000e+00 : f32
    %34 = vector.broadcast %cst_15 : f32 to vector<8x128xf32>
    %35 = arith.maximumf %33, %34 : vector<8x128xf32>
    %cst_16 = arith.constant dense<0.000000e+00> : vector<8x128xf32>
    %36 = tpu.matmul %14, %35, %cst_16 {dimension_numbers = #tpu.dot_dimension_numbers<[1], [0], [0], [1], [0, 0, 1, 1], [], []>} : vector<8x8xf32>, vector<8x128xf32>, vector<8x128xf32> -> vector<8x128xf32>
    %37 = arith.addf %36, %15 : vector<8x128xf32>
    %cst_17 = arith.constant 0.000000e+00 : f32
    %38 = vector.broadcast %cst_17 : f32 to vector<8x128xf32>
    %39 = arith.maximumf %37, %38 : vector<8x128xf32>
    %cst_18 = arith.constant dense<0.000000e+00> : vector<8x128xf32>
    %40 = tpu.matmul %18, %39, %cst_18 {dimension_numbers = #tpu.dot_dimension_numbers<[1], [0], [0], [1], [0, 0, 1, 1], [], []>} : vector<8x8xf32>, vector<8x128xf32>, vector<8x128xf32> -> vector<8x128xf32>
    %41 = arith.addf %40, %19 : vector<8x128xf32>
    %42 = vector.extract_strided_slice %41 {offsets = [0, 0], sizes = [4, 128], strides = [1, 1]} : vector<8x128xf32> to vector<4x128xf32>
    %c0_19 = arith.constant 0 : index
    %43 = arith.index_cast %21 : i32 to index
    %44 = vector.load %arg3[%c0_19, %43] : memref<4x1024xf32, #tpu.memory_space<vmem>>, vector<4x128xf32>
    tpu.vector_store %arg3[%c0_19, %43], %42 {strides = array<i32>} : memref<4x1024xf32, #tpu.memory_space<vmem>>, vector<4x128xf32>,
    %c1_i32 = arith.constant 1 : i32
    %c128_i32_20 = arith.constant 128 : i32
    %45 = arith.muli %c1_i32, %c128_i32_20 : i32
    %46 = tpu.assume_multiple %45, 128 : i32
    %c0_21 = arith.constant 0 : index
    %47 = arith.index_cast %46 : i32 to index
    %48 = vector.load %arg1[%c0_21, %47] : memref<3x1024xf32, #tpu.memory_space<vmem>>, vector<3x128xf32>
    %cst_22 = arith.constant dense<0.000000e+00> : vector<8x128xf32>
    %49 = tpu.matmul %2, %48, %cst_22 {dimension_numbers = #tpu.dot_dimension_numbers<[1], [0], [0], [1], [0, 0, 1, 1], [], []>} : vector<8x3xf32>, vector<3x128xf32>, vector<8x128xf32> -> vector<8x128xf32>
    %50 = arith.addf %49, %3 : vector<8x128xf32>
    %cst_23 = arith.constant 0.000000e+00 : f32
    %51 = vector.broadcast %cst_23 : f32 to vector<8x128xf32>
    %52 = arith.maximumf %50, %51 : vector<8x128xf32>
    %cst_24 = arith.constant dense<0.000000e+00> : vector<8x128xf32>
    %53 = tpu.matmul %6, %52, %cst_24 {dimension_numbers = #tpu.dot_dimension_numbers<[1], [0], [0], [1], [0, 0, 1, 1], [], []>} : vector<8x8xf32>, vector<8x128xf32>, vector<8x128xf32> -> vector<8x128xf32>
    %54 = arith.addf %53, %7 : vector<8x128xf32>
    %cst_25 = arith.constant 0.000000e+00 : f32
    %55 = vector.broadcast %cst_25 : f32 to vector<8x128xf32>
    %56 = arith.maximumf %54, %55 : vector<8x128xf32>
    %cst_26 = arith.constant dense<0.000000e+00> : vector<8x128xf32>
    %57 = tpu.matmul %10, %56, %cst_26 {dimension_numbers = #tpu.dot_dimension_numbers<[1], [0], [0], [1], [0, 0, 1, 1], [], []>} : vector<8x8xf32>, vector<8x128xf32>, vector<8x128xf32> -> vector<8x128xf32>
    %58 = arith.addf %57, %11 : vector<8x128xf32>
    %cst_27 = arith.constant 0.000000e+00 : f32
    %59 = vector.broadcast %cst_27 : f32 to vector<8x128xf32>
    %60 = arith.maximumf %58, %59 : vector<8x128xf32>
    %cst_28 = arith.constant dense<0.000000e+00> : vector<8x128xf32>
    %61 = tpu.matmul %14, %60, %cst_28 {dimension_numbers = #tpu.dot_dimension_numbers<[1], [0], [0], [1], [0, 0, 1, 1], [], []>} : vector<8x8xf32>, vector<8x128xf32>, vector<8x128xf32> -> vector<8x128xf32>
    %62 = arith.addf %61, %15 : vector<8x128xf32>
    %cst_29 = arith.constant 0.000000e+00 : f32
    %63 = vector.broadcast %cst_29 : f32 to vector<8x128xf32>
    %64 = arith.maximumf %62, %63 : vector<8x128xf32>
    %cst_30 = arith.constant dense<0.000000e+00> : vector<8x128xf32>
    %65 = tpu.matmul %18, %64, %cst_30 {dimension_numbers = #tpu.dot_dimension_numbers<[1], [0], [0], [1], [0, 0, 1, 1], [], []>} : vector<8x8xf32>, vector<8x128xf32>, vector<8x128xf32> -> vector<8x128xf32>
    %66 = arith.addf %65, %19 : vector<8x128xf32>
    %67 = vector.extract_strided_slice %66 {offsets = [0, 0], sizes = [4, 128], strides = [1, 1]} : vector<8x128xf32> to vector<4x128xf32>
    %c0_31 = arith.constant 0 : index
    %68 = arith.index_cast %46 : i32 to index
    %69 = vector.load %arg3[%c0_31, %68] : memref<4x1024xf32, #tpu.memory_space<vmem>>, vector<4x128xf32>
    tpu.vector_store %arg3[%c0_31, %68], %67 {strides = array<i32>} : memref<4x1024xf32, #tpu.memory_space<vmem>>, vector<4x128xf32>,
    %c2_i32 = arith.constant 2 : i32
    %c128_i32_32 = arith.constant 128 : i32
    %70 = arith.muli %c2_i32, %c128_i32_32 : i32
    %71 = tpu.assume_multiple %70, 128 : i32
    %c0_33 = arith.constant 0 : index
    %72 = arith.index_cast %71 : i32 to index
    %73 = vector.load %arg1[%c0_33, %72] : memref<3x1024xf32, #tpu.memory_space<vmem>>, vector<3x128xf32>
    %cst_34 = arith.constant dense<0.000000e+00> : vector<8x128xf32>
    %74 = tpu.matmul %2, %73, %cst_34 {dimension_numbers = #tpu.dot_dimension_numbers<[1], [0], [0], [1], [0, 0, 1, 1], [], []>} : vector<8x3xf32>, vector<3x128xf32>, vector<8x128xf32> -> vector<8x128xf32>
    %75 = arith.addf %74, %3 : vector<8x128xf32>
    %cst_35 = arith.constant 0.000000e+00 : f32
    %76 = vector.broadcast %cst_35 : f32 to vector<8x128xf32>
    %77 = arith.maximumf %75, %76 : vector<8x128xf32>
    %cst_36 = arith.constant dense<0.000000e+00> : vector<8x128xf32>
    %78 = tpu.matmul %6, %77, %cst_36 {dimension_numbers = #tpu.dot_dimension_numbers<[1], [0], [0], [1], [0, 0, 1, 1], [], []>} : vector<8x8xf32>, vector<8x128xf32>, vector<8x128xf32> -> vector<8x128xf32>
    %79 = arith.addf %78, %7 : vector<8x128xf32>
    %cst_37 = arith.constant 0.000000e+00 : f32
    %80 = vector.broadcast %cst_37 : f32 to vector<8x128xf32>
    %81 = arith.maximumf %79, %80 : vector<8x128xf32>
    %cst_38 = arith.constant dense<0.000000e+00> : vector<8x128xf32>
    %82 = tpu.matmul %10, %81, %cst_38 {dimension_numbers = #tpu.dot_dimension_numbers<[1], [0], [0], [1], [0, 0, 1, 1], [], []>} : vector<8x8xf32>, vector<8x128xf32>, vector<8x128xf32> -> vector<8x128xf32>
    %83 = arith.addf %82, %11 : vector<8x128xf32>
    %cst_39 = arith.constant 0.000000e+00 : f32
    %84 = vector.broadcast %cst_39 : f32 to vector<8x128xf32>
    %85 = arith.maximumf %83, %84 : vector<8x128xf32>
    %cst_40 = arith.constant dense<0.000000e+00> : vector<8x128xf32>
    %86 = tpu.matmul %14, %85, %cst_40 {dimension_numbers = #tpu.dot_dimension_numbers<[1], [0], [0], [1], [0, 0, 1, 1], [], []>} : vector<8x8xf32>, vector<8x128xf32>, vector<8x128xf32> -> vector<8x128xf32>
    %87 = arith.addf %86, %15 : vector<8x128xf32>
    %cst_41 = arith.constant 0.000000e+00 : f32
    %88 = vector.broadcast %cst_41 : f32 to vector<8x128xf32>
    %89 = arith.maximumf %87, %88 : vector<8x128xf32>
    %cst_42 = arith.constant dense<0.000000e+00> : vector<8x128xf32>
    %90 = tpu.matmul %18, %89, %cst_42 {dimension_numbers = #tpu.dot_dimension_numbers<[1], [0], [0], [1], [0, 0, 1, 1], [], []>} : vector<8x8xf32>, vector<8x128xf32>, vector<8x128xf32> -> vector<8x128xf32>
    %91 = arith.addf %90, %19 : vector<8x128xf32>
    %92 = vector.extract_strided_slice %91 {offsets = [0, 0], sizes = [4, 128], strides = [1, 1]} : vector<8x128xf32> to vector<4x128xf32>
    %c0_43 = arith.constant 0 : index
    %93 = arith.index_cast %71 : i32 to index
    %94 = vector.load %arg3[%c0_43, %93] : memref<4x1024xf32, #tpu.memory_space<vmem>>, vector<4x128xf32>
    tpu.vector_store %arg3[%c0_43, %93], %92 {strides = array<i32>} : memref<4x1024xf32, #tpu.memory_space<vmem>>, vector<4x128xf32>,
    %c3_i32 = arith.constant 3 : i32
    %c128_i32_44 = arith.constant 128 : i32
    %95 = arith.muli %c3_i32, %c128_i32_44 : i32
    %96 = tpu.assume_multiple %95, 128 : i32
    %c0_45 = arith.constant 0 : index
    %97 = arith.index_cast %96 : i32 to index
    %98 = vector.load %arg1[%c0_45, %97] : memref<3x1024xf32, #tpu.memory_space<vmem>>, vector<3x128xf32>
    %cst_46 = arith.constant dense<0.000000e+00> : vector<8x128xf32>
    %99 = tpu.matmul %2, %98, %cst_46 {dimension_numbers = #tpu.dot_dimension_numbers<[1], [0], [0], [1], [0, 0, 1, 1], [], []>} : vector<8x3xf32>, vector<3x128xf32>, vector<8x128xf32> -> vector<8x128xf32>
    %100 = arith.addf %99, %3 : vector<8x128xf32>
    %cst_47 = arith.constant 0.000000e+00 : f32
    %101 = vector.broadcast %cst_47 : f32 to vector<8x128xf32>
    %102 = arith.maximumf %100, %101 : vector<8x128xf32>
    %cst_48 = arith.constant dense<0.000000e+00> : vector<8x128xf32>
    %103 = tpu.matmul %6, %102, %cst_48 {dimension_numbers = #tpu.dot_dimension_numbers<[1], [0], [0], [1], [0, 0, 1, 1], [], []>} : vector<8x8xf32>, vector<8x128xf32>, vector<8x128xf32> -> vector<8x128xf32>
    %104 = arith.addf %103, %7 : vector<8x128xf32>
    %cst_49 = arith.constant 0.000000e+00 : f32
    %105 = vector.broadcast %cst_49 : f32 to vector<8x128xf32>
    %106 = arith.maximumf %104, %105 : vector<8x128xf32>
    %cst_50 = arith.constant dense<0.000000e+00> : vector<8x128xf32>
    %107 = tpu.matmul %10, %106, %cst_50 {dimension_numbers = #tpu.dot_dimension_numbers<[1], [0], [0], [1], [0, 0, 1, 1], [], []>} : vector<8x8xf32>, vector<8x128xf32>, vector<8x128xf32> -> vector<8x128xf32>
    %108 = arith.addf %107, %11 : vector<8x128xf32>
    %cst_51 = arith.constant 0.000000e+00 : f32
    %109 = vector.broadcast %cst_51 : f32 to vector<8x128xf32>
    %110 = arith.maximumf %108, %109 : vector<8x128xf32>
    %cst_52 = arith.constant dense<0.000000e+00> : vector<8x128xf32>
    %111 = tpu.matmul %14, %110, %cst_52 {dimension_numbers = #tpu.dot_dimension_numbers<[1], [0], [0], [1], [0, 0, 1, 1], [], []>} : vector<8x8xf32>, vector<8x128xf32>, vector<8x128xf32> -> vector<8x128xf32>
    %112 = arith.addf %111, %15 : vector<8x128xf32>
    %cst_53 = arith.constant 0.000000e+00 : f32
    %113 = vector.broadcast %cst_53 : f32 to vector<8x128xf32>
    %114 = arith.maximumf %112, %113 : vector<8x128xf32>
    %cst_54 = arith.constant dense<0.000000e+00> : vector<8x128xf32>
    %115 = tpu.matmul %18, %114, %cst_54 {dimension_numbers = #tpu.dot_dimension_numbers<[1], [0], [0], [1], [0, 0, 1, 1], [], []>} : vector<8x8xf32>, vector<8x128xf32>, vector<8x128xf32> -> vector<8x128xf32>
    %116 = arith.addf %115, %19 : vector<8x128xf32>
    %117 = vector.extract_strided_slice %116 {offsets = [0, 0], sizes = [4, 128], strides = [1, 1]} : vector<8x128xf32> to vector<4x128xf32>
    %c0_55 = arith.constant 0 : index
    %118 = arith.index_cast %96 : i32 to index
    %119 = vector.load %arg3[%c0_55, %118] : memref<4x1024xf32, #tpu.memory_space<vmem>>, vector<4x128xf32>
    tpu.vector_store %arg3[%c0_55, %118], %117 {strides = array<i32>} : memref<4x1024xf32, #tpu.memory_space<vmem>>, vector<4x128xf32>,
    %c4_i32 = arith.constant 4 : i32
    %c128_i32_56 = arith.constant 128 : i32
    %120 = arith.muli %c4_i32, %c128_i32_56 : i32
    %121 = tpu.assume_multiple %120, 128 : i32
    %c0_57 = arith.constant 0 : index
    %122 = arith.index_cast %121 : i32 to index
    %123 = vector.load %arg1[%c0_57, %122] : memref<3x1024xf32, #tpu.memory_space<vmem>>, vector<3x128xf32>
    %cst_58 = arith.constant dense<0.000000e+00> : vector<8x128xf32>
    %124 = tpu.matmul %2, %123, %cst_58 {dimension_numbers = #tpu.dot_dimension_numbers<[1], [0], [0], [1], [0, 0, 1, 1], [], []>} : vector<8x3xf32>, vector<3x128xf32>, vector<8x128xf32> -> vector<8x128xf32>
    %125 = arith.addf %124, %3 : vector<8x128xf32>
    %cst_59 = arith.constant 0.000000e+00 : f32
    %126 = vector.broadcast %cst_59 : f32 to vector<8x128xf32>
    %127 = arith.maximumf %125, %126 : vector<8x128xf32>
    %cst_60 = arith.constant dense<0.000000e+00> : vector<8x128xf32>
    %128 = tpu.matmul %6, %127, %cst_60 {dimension_numbers = #tpu.dot_dimension_numbers<[1], [0], [0], [1], [0, 0, 1, 1], [], []>} : vector<8x8xf32>, vector<8x128xf32>, vector<8x128xf32> -> vector<8x128xf32>
    %129 = arith.addf %128, %7 : vector<8x128xf32>
    %cst_61 = arith.constant 0.000000e+00 : f32
    %130 = vector.broadcast %cst_61 : f32 to vector<8x128xf32>
    %131 = arith.maximumf %129, %130 : vector<8x128xf32>
    %cst_62 = arith.constant dense<0.000000e+00> : vector<8x128xf32>
    %132 = tpu.matmul %10, %131, %cst_62 {dimension_numbers = #tpu.dot_dimension_numbers<[1], [0], [0], [1], [0, 0, 1, 1], [], []>} : vector<8x8xf32>, vector<8x128xf32>, vector<8x128xf32> -> vector<8x128xf32>
    %133 = arith.addf %132, %11 : vector<8x128xf32>
    %cst_63 = arith.constant 0.000000e+00 : f32
    %134 = vector.broadcast %cst_63 : f32 to vector<8x128xf32>
    %135 = arith.maximumf %133, %134 : vector<8x128xf32>
    %cst_64 = arith.constant dense<0.000000e+00> : vector<8x128xf32>
    %136 = tpu.matmul %14, %135, %cst_64 {dimension_numbers = #tpu.dot_dimension_numbers<[1], [0], [0], [1], [0, 0, 1, 1], [], []>} : vector<8x8xf32>, vector<8x128xf32>, vector<8x128xf32> -> vector<8x128xf32>
    %137 = arith.addf %136, %15 : vector<8x128xf32>
    %cst_65 = arith.constant 0.000000e+00 : f32
    %138 = vector.broadcast %cst_65 : f32 to vector<8x128xf32>
    %139 = arith.maximumf %137, %138 : vector<8x128xf32>
    %cst_66 = arith.constant dense<0.000000e+00> : vector<8x128xf32>
    %140 = tpu.matmul %18, %139, %cst_66 {dimension_numbers = #tpu.dot_dimension_numbers<[1], [0], [0], [1], [0, 0, 1, 1], [], []>} : vector<8x8xf32>, vector<8x128xf32>, vector<8x128xf32> -> vector<8x128xf32>
    %141 = arith.addf %140, %19 : vector<8x128xf32>
    %142 = vector.extract_strided_slice %141 {offsets = [0, 0], sizes = [4, 128], strides = [1, 1]} : vector<8x128xf32> to vector<4x128xf32>
    %c0_67 = arith.constant 0 : index
    %143 = arith.index_cast %121 : i32 to index
    %144 = vector.load %arg3[%c0_67, %143] : memref<4x1024xf32, #tpu.memory_space<vmem>>, vector<4x128xf32>
    tpu.vector_store %arg3[%c0_67, %143], %142 {strides = array<i32>} : memref<4x1024xf32, #tpu.memory_space<vmem>>, vector<4x128xf32>,
    %c5_i32 = arith.constant 5 : i32
    %c128_i32_68 = arith.constant 128 : i32
    %145 = arith.muli %c5_i32, %c128_i32_68 : i32
    %146 = tpu.assume_multiple %145, 128 : i32
    %c0_69 = arith.constant 0 : index
    %147 = arith.index_cast %146 : i32 to index
    %148 = vector.load %arg1[%c0_69, %147] : memref<3x1024xf32, #tpu.memory_space<vmem>>, vector<3x128xf32>
    %cst_70 = arith.constant dense<0.000000e+00> : vector<8x128xf32>
    %149 = tpu.matmul %2, %148, %cst_70 {dimension_numbers = #tpu.dot_dimension_numbers<[1], [0], [0], [1], [0, 0, 1, 1], [], []>} : vector<8x3xf32>, vector<3x128xf32>, vector<8x128xf32> -> vector<8x128xf32>
    %150 = arith.addf %149, %3 : vector<8x128xf32>
    %cst_71 = arith.constant 0.000000e+00 : f32
    %151 = vector.broadcast %cst_71 : f32 to vector<8x128xf32>
    %152 = arith.maximumf %150, %151 : vector<8x128xf32>
    %cst_72 = arith.constant dense<0.000000e+00> : vector<8x128xf32>
    %153 = tpu.matmul %6, %152, %cst_72 {dimension_numbers = #tpu.dot_dimension_numbers<[1], [0], [0], [1], [0, 0, 1, 1], [], []>} : vector<8x8xf32>, vector<8x128xf32>, vector<8x128xf32> -> vector<8x128xf32>
    %154 = arith.addf %153, %7 : vector<8x128xf32>
    %cst_73 = arith.constant 0.000000e+00 : f32
    %155 = vector.broadcast %cst_73 : f32 to vector<8x128xf32>
    %156 = arith.maximumf %154, %155 : vector<8x128xf32>
    %cst_74 = arith.constant dense<0.000000e+00> : vector<8x128xf32>
    %157 = tpu.matmul %10, %156, %cst_74 {dimension_numbers = #tpu.dot_dimension_numbers<[1], [0], [0], [1], [0, 0, 1, 1], [], []>} : vector<8x8xf32>, vector<8x128xf32>, vector<8x128xf32> -> vector<8x128xf32>
    %158 = arith.addf %157, %11 : vector<8x128xf32>
    %cst_75 = arith.constant 0.000000e+00 : f32
    %159 = vector.broadcast %cst_75 : f32 to vector<8x128xf32>
    %160 = arith.maximumf %158, %159 : vector<8x128xf32>
    %cst_76 = arith.constant dense<0.000000e+00> : vector<8x128xf32>
    %161 = tpu.matmul %14, %160, %cst_76 {dimension_numbers = #tpu.dot_dimension_numbers<[1], [0], [0], [1], [0, 0, 1, 1], [], []>} : vector<8x8xf32>, vector<8x128xf32>, vector<8x128xf32> -> vector<8x128xf32>
    %162 = arith.addf %161, %15 : vector<8x128xf32>
    %cst_77 = arith.constant 0.000000e+00 : f32
    %163 = vector.broadcast %cst_77 : f32 to vector<8x128xf32>
    %164 = arith.maximumf %162, %163 : vector<8x128xf32>
    %cst_78 = arith.constant dense<0.000000e+00> : vector<8x128xf32>
    %165 = tpu.matmul %18, %164, %cst_78 {dimension_numbers = #tpu.dot_dimension_numbers<[1], [0], [0], [1], [0, 0, 1, 1], [], []>} : vector<8x8xf32>, vector<8x128xf32>, vector<8x128xf32> -> vector<8x128xf32>
    %166 = arith.addf %165, %19 : vector<8x128xf32>
    %167 = vector.extract_strided_slice %166 {offsets = [0, 0], sizes = [4, 128], strides = [1, 1]} : vector<8x128xf32> to vector<4x128xf32>
    %c0_79 = arith.constant 0 : index
    %168 = arith.index_cast %146 : i32 to index
    %169 = vector.load %arg3[%c0_79, %168] : memref<4x1024xf32, #tpu.memory_space<vmem>>, vector<4x128xf32>
    tpu.vector_store %arg3[%c0_79, %168], %167 {strides = array<i32>} : memref<4x1024xf32, #tpu.memory_space<vmem>>, vector<4x128xf32>,
    %c6_i32 = arith.constant 6 : i32
    %c128_i32_80 = arith.constant 128 : i32
    %170 = arith.muli %c6_i32, %c128_i32_80 : i32
    %171 = tpu.assume_multiple %170, 128 : i32
    %c0_81 = arith.constant 0 : index
    %172 = arith.index_cast %171 : i32 to index
    %173 = vector.load %arg1[%c0_81, %172] : memref<3x1024xf32, #tpu.memory_space<vmem>>, vector<3x128xf32>
    %cst_82 = arith.constant dense<0.000000e+00> : vector<8x128xf32>
    %174 = tpu.matmul %2, %173, %cst_82 {dimension_numbers = #tpu.dot_dimension_numbers<[1], [0], [0], [1], [0, 0, 1, 1], [], []>} : vector<8x3xf32>, vector<3x128xf32>, vector<8x128xf32> -> vector<8x128xf32>
    %175 = arith.addf %174, %3 : vector<8x128xf32>
    %cst_83 = arith.constant 0.000000e+00 : f32
    %176 = vector.broadcast %cst_83 : f32 to vector<8x128xf32>
    %177 = arith.maximumf %175, %176 : vector<8x128xf32>
    %cst_84 = arith.constant dense<0.000000e+00> : vector<8x128xf32>
    %178 = tpu.matmul %6, %177, %cst_84 {dimension_numbers = #tpu.dot_dimension_numbers<[1], [0], [0], [1], [0, 0, 1, 1], [], []>} : vector<8x8xf32>, vector<8x128xf32>, vector<8x128xf32> -> vector<8x128xf32>
    %179 = arith.addf %178, %7 : vector<8x128xf32>
    %cst_85 = arith.constant 0.000000e+00 : f32
    %180 = vector.broadcast %cst_85 : f32 to vector<8x128xf32>
    %181 = arith.maximumf %179, %180 : vector<8x128xf32>
    %cst_86 = arith.constant dense<0.000000e+00> : vector<8x128xf32>
    %182 = tpu.matmul %10, %181, %cst_86 {dimension_numbers = #tpu.dot_dimension_numbers<[1], [0], [0], [1], [0, 0, 1, 1], [], []>} : vector<8x8xf32>, vector<8x128xf32>, vector<8x128xf32> -> vector<8x128xf32>
    %183 = arith.addf %182, %11 : vector<8x128xf32>
    %cst_87 = arith.constant 0.000000e+00 : f32
    %184 = vector.broadcast %cst_87 : f32 to vector<8x128xf32>
    %185 = arith.maximumf %183, %184 : vector<8x128xf32>
    %cst_88 = arith.constant dense<0.000000e+00> : vector<8x128xf32>
    %186 = tpu.matmul %14, %185, %cst_88 {dimension_numbers = #tpu.dot_dimension_numbers<[1], [0], [0], [1], [0, 0, 1, 1], [], []>} : vector<8x8xf32>, vector<8x128xf32>, vector<8x128xf32> -> vector<8x128xf32>
    %187 = arith.addf %186, %15 : vector<8x128xf32>
    %cst_89 = arith.constant 0.000000e+00 : f32
    %188 = vector.broadcast %cst_89 : f32 to vector<8x128xf32>
    %189 = arith.maximumf %187, %188 : vector<8x128xf32>
    %cst_90 = arith.constant dense<0.000000e+00> : vector<8x128xf32>
    %190 = tpu.matmul %18, %189, %cst_90 {dimension_numbers = #tpu.dot_dimension_numbers<[1], [0], [0], [1], [0, 0, 1, 1], [], []>} : vector<8x8xf32>, vector<8x128xf32>, vector<8x128xf32> -> vector<8x128xf32>
    %191 = arith.addf %190, %19 : vector<8x128xf32>
    %192 = vector.extract_strided_slice %191 {offsets = [0, 0], sizes = [4, 128], strides = [1, 1]} : vector<8x128xf32> to vector<4x128xf32>
    %c0_91 = arith.constant 0 : index
    %193 = arith.index_cast %171 : i32 to index
    %194 = vector.load %arg3[%c0_91, %193] : memref<4x1024xf32, #tpu.memory_space<vmem>>, vector<4x128xf32>
    tpu.vector_store %arg3[%c0_91, %193], %192 {strides = array<i32>} : memref<4x1024xf32, #tpu.memory_space<vmem>>, vector<4x128xf32>,
    %c7_i32 = arith.constant 7 : i32
    %c128_i32_92 = arith.constant 128 : i32
    %195 = arith.muli %c7_i32, %c128_i32_92 : i32
    %196 = tpu.assume_multiple %195, 128 : i32
    %c0_93 = arith.constant 0 : index
    %197 = arith.index_cast %196 : i32 to index
    %198 = vector.load %arg1[%c0_93, %197] : memref<3x1024xf32, #tpu.memory_space<vmem>>, vector<3x128xf32>
    %cst_94 = arith.constant dense<0.000000e+00> : vector<8x128xf32>
    %199 = tpu.matmul %2, %198, %cst_94 {dimension_numbers = #tpu.dot_dimension_numbers<[1], [0], [0], [1], [0, 0, 1, 1], [], []>} : vector<8x3xf32>, vector<3x128xf32>, vector<8x128xf32> -> vector<8x128xf32>
    %200 = arith.addf %199, %3 : vector<8x128xf32>
    %cst_95 = arith.constant 0.000000e+00 : f32
    %201 = vector.broadcast %cst_95 : f32 to vector<8x128xf32>
    %202 = arith.maximumf %200, %201 : vector<8x128xf32>
    %cst_96 = arith.constant dense<0.000000e+00> : vector<8x128xf32>
    %203 = tpu.matmul %6, %202, %cst_96 {dimension_numbers = #tpu.dot_dimension_numbers<[1], [0], [0], [1], [0, 0, 1, 1], [], []>} : vector<8x8xf32>, vector<8x128xf32>, vector<8x128xf32> -> vector<8x128xf32>
    %204 = arith.addf %203, %7 : vector<8x128xf32>
    %cst_97 = arith.constant 0.000000e+00 : f32
    %205 = vector.broadcast %cst_97 : f32 to vector<8x128xf32>
    %206 = arith.maximumf %204, %205 : vector<8x128xf32>
    %cst_98 = arith.constant dense<0.000000e+00> : vector<8x128xf32>
    %207 = tpu.matmul %10, %206, %cst_98 {dimension_numbers = #tpu.dot_dimension_numbers<[1], [0], [0], [1], [0, 0, 1, 1], [], []>} : vector<8x8xf32>, vector<8x128xf32>, vector<8x128xf32> -> vector<8x128xf32>
    %208 = arith.addf %207, %11 : vector<8x128xf32>
    %cst_99 = arith.constant 0.000000e+00 : f32
    %209 = vector.broadcast %cst_99 : f32 to vector<8x128xf32>
    %210 = arith.maximumf %208, %209 : vector<8x128xf32>
    %cst_100 = arith.constant dense<0.000000e+00> : vector<8x128xf32>
    %211 = tpu.matmul %14, %210, %cst_100 {dimension_numbers = #tpu.dot_dimension_numbers<[1], [0], [0], [1], [0, 0, 1, 1], [], []>} : vector<8x8xf32>, vector<8x128xf32>, vector<8x128xf32> -> vector<8x128xf32>
    %212 = arith.addf %211, %15 : vector<8x128xf32>
    %cst_101 = arith.constant 0.000000e+00 : f32
    %213 = vector.broadcast %cst_101 : f32 to vector<8x128xf32>
    %214 = arith.maximumf %212, %213 : vector<8x128xf32>
    %cst_102 = arith.constant dense<0.000000e+00> : vector<8x128xf32>
    %215 = tpu.matmul %18, %214, %cst_102 {dimension_numbers = #tpu.dot_dimension_numbers<[1], [0], [0], [1], [0, 0, 1, 1], [], []>} : vector<8x8xf32>, vector<8x128xf32>, vector<8x128xf32> -> vector<8x128xf32>
    %216 = arith.addf %215, %19 : vector<8x128xf32>
    %217 = vector.extract_strided_slice %216 {offsets = [0, 0], sizes = [4, 128], strides = [1, 1]} : vector<8x128xf32> to vector<4x128xf32>
    %c0_103 = arith.constant 0 : index
    %218 = arith.index_cast %196 : i32 to index
    %219 = vector.load %arg3[%c0_103, %218] : memref<4x1024xf32, #tpu.memory_space<vmem>>, vector<4x128xf32>
    tpu.vector_store %arg3[%c0_103, %218], %217 {strides = array<i32>} : memref<4x1024xf32, #tpu.memory_space<vmem>>, vector<4x128xf32>,
    %c8_i32 = arith.constant 8 : i32
    return
  }
  func.func @transform_0(%arg0: i32) -> (i32, i32) {
    %c0_i32 = arith.constant 0 : i32
    %c0_i32_0 = arith.constant 0 : i32
    return %c0_i32, %arg0 : i32, i32
  }
  func.func @transform_1(%arg0: i32) -> (i32, i32, i32) {
    %c0_i32 = arith.constant 0 : i32
    %c0_i32_0 = arith.constant 0 : i32
    %c0_i32_1 = arith.constant 0 : i32
    %c0_i32_2 = arith.constant 0 : i32
    return %c0_i32, %c0_i32_0, %c0_i32_1 : i32, i32, i32
  }
  func.func @transform_2(%arg0: i32) -> (i32, i32) {
    %c0_i32 = arith.constant 0 : i32
    %c0_i32_0 = arith.constant 0 : i32
    return %c0_i32, %arg0 : i32, i32
  }
}

</mosaic_0001>

<bundles_post_ra>
// kernel: tpu_custom_call.1
= control target key start
LH: loop header
LB: loop body
LE: loop exit
PB: predicated region body
PF: predicated region fallthrough
CT: control target
= control target key end

     0   :  { %7 = vsyncpa [#allocation3], 0  ;;  %s4252_s0 = inlined_call_operand.hbm [shape: f32[3,2048], index: 0, kind: input, shape index: {}]   ;;  %s4253_s1 = inlined_call_operand.hbm [shape: f32[5,8,136], index: 1, kind: input, shape index: {}]   ;;  %s4254_s2 = inlined_call_operand.hbm [shape: f32[4,2048], index: 2, kind: output, shape index: {}]  }
   0x1   :  { %9 = vsyncpa [#allocation3 + $0x1], 0 }
   0x2   :  { %10 = vsyncpa [#allocation6], 0 }
   0x3   :  { %11 = vsyncpa [#allocation4], 0 }
   0x4   :  { %13 = vsyncpa [#allocation4 + $0x1], 0  ;;  %s3763_s9 = smov 0   ;;  %s3765_s10 = smov 0  }
   0x5   :  { %s3767_s11 = smov 0   ;;  %s3769_s12 = smov 0  }
   0x6 LB: > { %s3784_s13 = sadd.s32 4294967295, %s3739_s12   ;;  %s3190_s14 = sadd.s32 4294967294, %s3739_s12   ;;  %s3739_s12 = sphi %s3769_s12, %s4274_s12   ;;  %s3735_s11 = sphi %s3767_s11, %s4273_s11   ;;  %s3731_s10 = sphi %s3765_s10, %s4272_s10   ;;  %s3727_s9 = sphi %s3763_s9, %s4271_s9  }
   0x7   : > { %p39_p0 = scmp.ne.s32.totalorder %s3731_s10, %s3727_s9  ;;  %p4255_p1 = scmp.eq.s32.totalorder %s3784_s13, 0 }
   0x8   : > { %p90_p3 = scmp.eq.s32.totalorder %s3190_s14, 1  ;;  %p3191_p5 = scmp.ge.s32.totalorder %s3739_s12, 1 }
   0x9   : > { %p3793_p4 = por %p4255_p1, %p39_p0  ;;  %p97_p7 = scmp.lt.s32.totalorder %s3739_s12, 3 }
   0xa   : > { %p3798_p6 = por %p90_p3, %p39_p0  ;;  %s3741_s18 = smov [#allocation5]  }
   0xb   : > { %s4258_s15 = scalar_select %p3793_p4, 1, 0 }
   0xc   : > { %s4259_s16 = scalar_select %p3798_p6, 1, 0 }
   0xd   : > { %p3803_p8 = pnand %p3191_p5, %p97_p7  ;;  %s109_s19 = sshll.u32 %s3741_s18, 4  ;;  %s3807_s19 = int_to_ptr.vmem [resolvable:$true] %s109_s19 }
   0xe   : > { %s3819_s21 = sadd.s32 1, %s3739_s12   ;;  %s26_s22 = sadd.s32 1, %s3735_s11 }
   0xf   : > { %s4260_s17 = scalar_select %p3803_p8, 1, 0 }
  0x10   : > { %p3558_p9 = pneg %p3803_p8  ;;  %s23_s23 = ssub.s32 %s3739_s12, %s3819_s21 }
  0x11   : > { %s3611_s26 = scalar_lea.hbm %s4253_s1, 1280 }
  0x12   : > { %p3814_p11 = pnand %p3558_p9, %p4255_p1  ;;  %p3612_p12 = scmp.ne.s32.totalorder %s4253_s1, %s3611_s26 }
  0x13   : > { %p3618_p5 = scmp.lt.u32.totalorder %s3611_s26, %s4253_s1 }
  0x14   : > { %p3613_p13 = pneg %p3814_p11 }
  0x16   : > { %p3614_p0 = pnand %p3613_p13, %p3612_p12 }
  0x18   : > { %p3615_p3 = pneg %p3614_p0 }
  0x1a   : > { %p3620_p7 = pnand %p3618_p5, %p3615_p3 }
  0x1c   : > { %3623 = shalt.err (!%p3620_p7)
}
  0x1d   : > { %s3624_s3 = scalar_lea.vmem %s3807_s19, 1280  ;;  %p3632_p2 = scmp.lt.s32.totalorder %s3807_s19, %s3807_s19 }
  0x1e   : > { %p3625_p9 = scmp.ne.s32.totalorder %s3807_s19, %s3624_s3  ;;  %p3633_p6 = scmp.lt.s32.totalorder %s3624_s3, %s3624_s3 }
  0x20   : > { %p3627_p10 = pnand %p3625_p9, %p3613_p13  ;;  %p3634_p4 = por %p3633_p6, %p3632_p2 }
  0x22   : > { %p3628_p1 = pneg %p3627_p10 }
  0x24   : > { %p3635_p8 = pnand %p3634_p4, %p3628_p1 }
  0x26   : > { %3638 = shalt.err (!%p3635_p8)
}
  0x27   : > { %s3742_s4 = smov 256   ;;  %s3743_s5 = smov 16  }
  0x28   : > { %3561 = dma.hbm_to_vmem [thread:$0]  (!%p3814_p11), %s4253_s1, 1280, %s3807_s19, [#allocation6], %s3742_s4, %s3742_s4, %s3743_s5  }
  0x29   : > { %p24_p2 = scmp.eq.s32.totalorder %s23_s23, 0  ;;  %p33_p1 = scmp.ne.s32.totalorder %s3735_s11, %s3731_s10 }
  0x2a   : > { %p34_p4 = scmp.eq.s32.totalorder %s3739_s12, 0  ;;  %p3571_p6 = scmp.lt.s32.totalorder %s3739_s12, 2 }
  0x2b   : > { %s3850_s8 = scalar_select %p24_p2, %s3735_s11, %s26_s22  }
  0x2c   : > { %p35_p8 = por %p34_p4, %p33_p1  ;;  %p4262_p10 = scmp.eq.s32.totalorder %s3784_s13, 1 }
  0x2d   : > { %s123_s18 = sand.u32 1, %s3735_s11   ;;  %s3268_s24 = sshll.u32 %s3739_s12, 9 }
  0x2e   : > { %p3854_p12 = por %p4262_p10, %p33_p1  ;;  %s3194_s25 = sshll.u32 %s123_s18, 5 }
  0x2f   : > { %s3863_s27 = scalar_lea.hbm %s4252_s0, %s3268_s24  ;;  %s127_s19 = scalar_lea.vmem [#allocation2], %s3194_s25 }
  0x30   : > { %s135_s22 = sshll.u32 %s127_s19, 4  ;;  %p3865_p11 = pnand %p3571_p6, %p35_p8  ;;  %s3869_s22 = int_to_ptr.vmem [resolvable:$true] %s135_s22 }
  0x31   : > { %s124_s28 = scalar_lea.sflag [#allocation3], %s123_s18  ;;  %s3639_s29 = scalar_lea.hbm %s3863_s27, 512 }
  0x32   : > { %p3640_p13 = scmp.ne.s32.totalorder %s3863_s27, %s3639_s29  ;;  %p3641_p0 = pneg %p3865_p11 }
  0x33   : > { %s3644_s4 = scalar_lea.hbm %s4252_s0, 1024  ;;  %p3645_p7 = scmp.lt.u32.totalorder %s3863_s27, %s4252_s0 }
  0x34   : > { %p3642_p3 = pnand %p3641_p0, %p3640_p13  ;;  %p3646_p9 = scmp.lt.u32.totalorder %s3644_s4, %s3639_s29 }
  0x35   : > { %p3648_p1 = scmp.lt.u32.totalorder %s3639_s29, %s3863_s27 }
  0x36   : > { %p3643_p5 = pneg %p3642_p3  ;;  %p3647_p2 = por %p3646_p9, %p3645_p7 }
  0x38   : > { %p3649_p4 = por %p3648_p1, %p3647_p2 }
  0x3a   : > { %p3650_p6 = pnand %p3649_p4, %p3643_p5 }
  0x3c   : > { %3653 = shalt.err (!%p3650_p6)
}
  0x3d   : > { %s3654_s7 = scalar_lea.vmem %s3869_s22, 512  ;;  %s3744_s18 = smov [#allocation2]  }
  0x3e   : > { %p3655_p8 = scmp.ne.s32.totalorder %s3869_s22, %s3654_s7  ;;  %s3659_s24 = sshll.u32 %s3744_s18, 4  ;;  %s3660_s24 = int_to_ptr.vmem [resolvable:$false] %s3659_s24 }
  0x3f   : > { %s3661_s25 = scalar_lea.vmem %s3660_s24, 1024  ;;  %p3662_p3 = scmp.lt.s32.totalorder %s3869_s22, %s3660_s24 }
  0x40   : > { %p3657_p10 = pnand %p3655_p8, %p3641_p0  ;;  %p3663_p7 = scmp.lt.s32.totalorder %s3661_s25, %s3654_s7 }
  0x42   : > { %p3658_p13 = pneg %p3657_p10  ;;  %p3664_p9 = por %p3663_p7, %p3662_p3 }
  0x44   : > { %p3665_p2 = pnand %p3664_p9, %p3658_p13 }
  0x46   : > { %3668 = shalt.err (!%p3665_p2)
}
  0x47   : > { %3565 = dma.hbm_to_vmem [thread:$0]  (!%p3865_p11), %s3863_s27, 512, %s3869_s22, %s124_s28  }
  0x48   : > { %p4265_p5 = scmp.ne.s32.totalorder %s4260_s17, 0 }
  0x49   : > { %s3899_s20 = sand.u32 (!%p4265_p5), 1, %s3731_s10   ;;  %p4266_p0 = scmp.ne.s32.totalorder (!%p4265_p5), %s4258_s15, 0 }
  0x4a   : > { %144 = sbr.rel (%p4265_p5) target bundleno = 5770 (0x168a), region = 28  ;;  %s3198_s26 = sshll.u32 (!%p4265_p5), %s3899_s20, 5 }
  0x4b   : > { %s147_s19 = scalar_lea.sflag (!%p4265_p5), [#allocation3], %s3899_s20  ;;  %s3905_s29 = scalar_lea.vmem (!%p4265_p5), [#allocation2], %s3198_s26 }
  0x51   : > { %3714 = dma.done.wait (%p4266_p0), %s147_s19, 512  }
  0x52   : > { %3716 = vsyncadd (%p4266_p0), %s147_s19, 4294966784  ;;  %p4267_p11 = scmp.eq.s32.totalorder %s3784_s13, 0 }
  0x54   : > { %3718 = dma.done.wait (%p4267_p11), [#allocation6], 1280   ;;  %p4268_p1 = pmov %p4267_p11 }
  0x55   : > { %v3745_v0 = vmov 0.0   ;;  %vm3746_vm0 = vmmov 0   ;;  %vm196_vm1 = vcmask 1042432   ;;  %vm192_vm2 = vcmask 23552   ;;  %v191_v1 = vld [vmem:[%s3905_s29] sm:$0x7] }
  0x56   : > { %3720 = vsyncadd (%p4268_p1), [#allocation6], 4294966016  ;;  %3350 = vmatprep.subr.mxu0 %v3745_v0  ;;  %3352 = vmatprep.mubr.msk.f32.mxu0 %vm3746_vm0, %v3745_v0  ;;  %v3922_v2 = vld [vmem:[#allocation5 + $0x8] sm:$0xff]  ;;  %v3930_v3 = vld [vmem:[#allocation5] sm:$0xff]  ;;  %vm271_vm3 = vcmask 64512   ;;  %s3988_s15 = scalar_lea.vmem [#allocation7], %s3198_s26 }
  0x57   : > { %3355 = vmatprep.subr.mxu1 %v3745_v0  ;;  %3357 = vmatprep.mubr.msk.f32.mxu1 %vm3746_vm0, %v3745_v0  ;;  %v3933_v8 = vld [vmem:[#allocation5 + $0x18] sm:$0xff]  ;;  %v3940_v9 = vld [vmem:[#allocation5 + $0x10] sm:$0xff]  ;;  %v3943_v14 = vld [vmem:[#allocation5 + $0x28] sm:$0xff]  ;;  %s3269_s17 = sshll.u32 %s3784_s13, 9  ;;  %s3110_s27 = sshll.u32 %s3988_s15, 4  ;;  %s4209_s27 = int_to_ptr.vmem [resolvable:$true] %s3110_s27 }
  0x58   : > { %3351 = vmatpush3.msk.msra.mxu0 %vm196_vm1, %v191_v1  ;;  %v3950_v15 = vld [vmem:[#allocation5 + $0x20] sm:$0xff]  ;;  %v3953_v20 = vld [vmem:[#allocation5 + $0x38] sm:$0xff]  ;;  %v3967_v22 = vld [vmem:[#allocation5 + $0x30] sm:$0xff]  ;;  %s4207_s28 = scalar_lea.hbm %s4254_s2, %s3269_s17  ;;  %s3096_s30 = scalar_lea.sflag [#allocation4], %s3899_s20 }
  0x59   : > { %3353 = vmatmul.mubr.msk.f32.vlgmr.msra.gmra.mrb[0].mxu0 %vm192_vm2, %v3922_v2  ;;  %3360 = vmatprep.subr.mxu0 %v3745_v0  ;;  %v3207_v21 = vld [vmem:[%s3905_s29 + $0x4] sm:$0x7]  ;;  %v3970_v27 = vld [vmem:[#allocation5 + $0x48] sm:$0xff]  ;;  %s3669_s3 = scalar_lea.vmem %s4209_s27, 512  ;;  %s3747_s13 = smov [#allocation7]  }
  0x5a   : > { %3362 = vmatprep.mubr.msk.f32.mxu0 %vm3746_vm0, %v3745_v0  ;;  %v3983_v32 = vld [vmem:[#allocation5 + $0x40] sm:$0xff]  ;;  %v3215_v44 = vld [vmem:[%s3905_s29 + $0x8] sm:$0x7]  ;;  %v3223_v1 = vld [vmem:[%s3905_s29 + $0xc] sm:$0x7]  ;;  %p3670_p4 = scmp.ne.s32.totalorder %s4209_s27, %s3669_s3  ;;  %s3673_s4 = sshll.u32 %s3747_s13, 4  ;;  %s3674_s4 = int_to_ptr.vmem [resolvable:$false] %s3673_s4 }
  0x5b   : > { %s3675_s5 = scalar_lea.vmem %s3674_s4, 1024  ;;  %p3676_p10 = scmp.lt.s32.totalorder %s4209_s27, %s3674_s4 }
  0x5c   : > { %p3671_p6 = pnand %p3670_p4, %p3854_p12  ;;  %p3677_p13 = scmp.lt.s32.totalorder %s3675_s5, %s3669_s3 }
  0x5e   : > { %p3672_p8 = pneg %p3671_p6  ;;  %p3678_p3 = por %p3677_p13, %p3676_p10 }
  0x60   : > { %p3679_p7 = pnand %p3678_p3, %p3672_p8 }
 0x12c   : > { %v266_v4 = vpop.f32.mrb[0].mxu0 }
 0x12d   : > { %v267_v5 = vadd.f32 %v266_v4, %v3930_v3  ;;  %v3354_v6 = vpop.f32.mrb[1].mxu0 }
 0x12f   : > { %v270_v7 = vmax.f32 %v267_v5, 0.0 }
 0x131   : > { %3356 = vmatpush3.msra.mxu1 %v270_v7 }
 0x132   : > { %3358 = vmatmul.mubr.msk.f32.vlgmr.msra.gmra.mrb[0].mxu1 %vm271_vm3, %v3933_v8  ;;  %3365 = vmatprep.subr.mxu1 %v3745_v0 }
 0x133   : > { %3367 = vmatprep.mubr.msk.f32.mxu1 %vm3746_vm0, %v3745_v0 }
 0x205   : > { %v341_v10 = vpop.f32.mrb[0].mxu1 }
 0x206   : > { %v342_v11 = vadd.f32 %v341_v10, %v3940_v9  ;;  %v3359_v12 = vpop.f32.mrb[1].mxu1 }
 0x208   : > { %v345_v13 = vmax.f32 %v342_v11, 0.0 }
 0x20a   : > { %3361 = vmatpush3.msra.mxu0 %v345_v13 }
 0x20b   : > { %3363 = vmatmul.mubr.msk.f32.vlgmr.msra.gmra.mrb[2].mxu0 %vm271_vm3, %v3943_v14  ;;  %3370 = vmatprep.subr.mxu0 %v3745_v0 }
 0x20c   : > { %3372 = vmatprep.mubr.msk.f32.mxu0 %vm3746_vm0, %v3745_v0 }
 0x2de   : > { %v415_v16 = vpop.f32.mrb[2].mxu0 }
 0x2df   : > { %v416_v17 = vadd.f32 %v415_v16, %v3950_v15  ;;  %v3364_v18 = vpop.f32.mrb[3].mxu0 }
 0x2e1   : > { %v419_v19 = vmax.f32 %v416_v17, 0.0 }
 0x2e3   : > { %3366 = vmatpush3.msra.mxu1 %v419_v19 }
 0x2e4   : > { %3368 = vmatmul.mubr.msk.f32.vlgmr.msra.gmra.mrb[2].mxu1 %vm271_vm3, %v3953_v20  ;;  %3375 = vmatprep.subr.mxu1 %v3745_v0 }
 0x2e5   : > { %3376 = vmatpush3.msk.msra.mxu1 %vm196_vm1, %v3207_v21  ;;  %3377 = vmatprep.mubr.msk.f32.mxu1 %vm3746_vm0, %v3745_v0 }
 0x2e6   : > { %3385 = vmatprep.subr.mxu1 %v3745_v0 }
 0x2e8   : > { %3378 = vmatmul.mubr.msk.f32.vlgmr.msra.gmra.mrb[4].mxu1 %vm192_vm2, %v3922_v2 }
 0x2e9   : > { %3387 = vmatprep.mubr.msk.f32.mxu1 %vm3746_vm0, %v3745_v0 }
 0x3b7   : > { %v489_v23 = vpop.f32.mrb[2].mxu1 }
 0x3b8   : > { %v490_v24 = vadd.f32 %v489_v23, %v3967_v22  ;;  %v3369_v25 = vpop.f32.mrb[3].mxu1 }
 0x3ba   : > { %v493_v26 = vmax.f32 %v490_v24, 0.0 }
 0x3bb   : > { %v639_v28 = vpop.f32.mrb[4].mxu1 }
 0x3bc   : > { %v640_v29 = vadd.f32 %v639_v28, %v3930_v3  ;;  %3371 = vmatpush3.msra.mxu0 %v493_v26  ;;  %v3379_v30 = vpop.f32.mrb[5].mxu1 }
 0x3bd   : > { %3373 = vmatmul.mubr.msk.f32.vlgmr.msra.gmra.mrb[4].mxu0 %vm271_vm3, %v3970_v27  ;;  %3380 = vmatprep.subr.mxu0 %v3745_v0  ;;  %v3231_v30 = vld [vmem:[%s3905_s29 + $0x10] sm:$0x7] }
 0x3be   : > { %v643_v31 = vmax.f32 %v640_v29, 0.0  ;;  %3382 = vmatprep.mubr.msk.f32.mxu0 %vm3746_vm0, %v3745_v0 }
 0x3c0   : > { %3381 = vmatpush3.msra.mxu0 %v643_v31 }
 0x3c1   : > { %3383 = vmatmul.mubr.msk.f32.vlgmr.msra.gmra.mrb[6].mxu0 %vm271_vm3, %v3933_v8  ;;  %3390 = vmatprep.subr.mxu0 %v3745_v0 }
 0x3c2   : > { %3392 = vmatprep.mubr.msk.f32.mxu0 %vm3746_vm0, %v3745_v0 }
 0x490   : > { %v563_v33 = vpop.f32.mrb[4].mxu0 }
 0x491   : > { %v564_v34 = vadd.f32 %v563_v33, %v3983_v32  ;;  %v3374_v35 = vpop.f32.mrb[5].mxu0 }
 0x493   : > { %567 = vst [vmem:[%s3988_s15] sm:$0xf] %v564_v34 }
 0x494   : > { %v710_v36 = vpop.f32.mrb[6].mxu0 }
 0x495   : > { %v711_v37 = vadd.f32 %v710_v36, %v3940_v9  ;;  %v3384_v38 = vpop.f32.mrb[7].mxu0 }
 0x497   : > { %v714_v39 = vmax.f32 %v711_v37, 0.0 }
 0x499   : > { %3386 = vmatpush3.msra.mxu1 %v714_v39 }
 0x49a   : > { %3388 = vmatmul.mubr.msk.f32.vlgmr.msra.gmra.mrb[6].mxu1 %vm271_vm3, %v3943_v14  ;;  %3395 = vmatprep.subr.mxu1 %v3745_v0 }
 0x49b   : > { %3397 = vmatprep.mubr.msk.f32.mxu1 %vm3746_vm0, %v3745_v0 }
 0x56d   : > { %v781_v40 = vpop.f32.mrb[6].mxu1 }
 0x56e   : > { %v782_v41 = vadd.f32 %v781_v40, %v3950_v15  ;;  %v3389_v42 = vpop.f32.mrb[7].mxu1 }
 0x570   : > { %v785_v43 = vmax.f32 %v782_v41, 0.0 }
 0x572   : > { %3391 = vmatpush3.msra.mxu0 %v785_v43 }
 0x573   : > { %3393 = vmatmul.mubr.msk.f32.vlgmr.msra.gmra.mrb[8].mxu0 %vm271_vm3, %v3953_v20  ;;  %3400 = vmatprep.subr.mxu0 %v3745_v0 }
 0x574   : > { %3401 = vmatpush3.msk.msra.mxu0 %vm196_vm1, %v3215_v44  ;;  %3402 = vmatprep.mubr.msk.f32.mxu0 %vm3746_vm0, %v3745_v0 }
 0x575   : > { %3410 = vmatprep.subr.mxu0 %v3745_v0 }
 0x577   : > { %3403 = vmatmul.mubr.msk.f32.vlgmr.msra.gmra.mrb[10].mxu0 %vm192_vm2, %v3922_v2 }
 0x578   : > { %3412 = vmatprep.mubr.msk.f32.mxu0 %vm3746_vm0, %v3745_v0 }
 0x646   : > { %v852_v45 = vpop.f32.mrb[8].mxu0 }
 0x647   : > { %v853_v46 = vadd.f32 %v852_v45, %v3967_v22  ;;  %v3394_v47 = vpop.f32.mrb[9].mxu0 }
 0x649   : > { %v856_v48 = vmax.f32 %v853_v46, 0.0 }
 0x64a   : > { %v1000_v49 = vpop.f32.mrb[10].mxu0 }
 0x64b   : > { %v1001_v50 = vadd.f32 %v1000_v49, %v3930_v3  ;;  %3396 = vmatpush3.msra.mxu1 %v856_v48  ;;  %v3404_v51 = vpop.f32.mrb[11].mxu0 }
 0x64c   : > { %3398 = vmatmul.mubr.msk.f32.vlgmr.msra.gmra.mrb[8].mxu1 %vm271_vm3, %v3970_v27  ;;  %3405 = vmatprep.subr.mxu1 %v3745_v0  ;;  %v3239_v51 = vld [vmem:[%s3905_s29 + $0x14] sm:$0x7] }
 0x64d   : > { %v1004_v52 = vmax.f32 %v1001_v50, 0.0  ;;  %3407 = vmatprep.mubr.msk.f32.mxu1 %vm3746_vm0, %v3745_v0 }
 0x64f   : > { %3406 = vmatpush3.msra.mxu1 %v1004_v52 }
 0x650   : > { %3408 = vmatmul.mubr.msk.f32.vlgmr.msra.gmra.mrb[10].mxu1 %vm271_vm3, %v3933_v8  ;;  %3415 = vmatprep.subr.mxu1 %v3745_v0 }
 0x651   : > { %3417 = vmatprep.mubr.msk.f32.mxu1 %vm3746_vm0, %v3745_v0 }
 0x71f   : > { %v923_v53 = vpop.f32.mrb[8].mxu1 }
 0x720   : > { %v924_v54 = vadd.f32 %v923_v53, %v3983_v32  ;;  %v3399_v55 = vpop.f32.mrb[9].mxu1 }
 0x722   : > { %3214 = vst [vmem:[%s3988_s15 + $0x4] sm:$0xf] %v924_v54 }
 0x723   : > { %v1071_v56 = vpop.f32.mrb[10].mxu1 }
 0x724   : > { %v1072_v57 = vadd.f32 %v1071_v56, %v3940_v9  ;;  %v3409_v58 = vpop.f32.mrb[11].mxu1 }
 0x726   : > { %v1075_v59 = vmax.f32 %v1072_v57, 0.0 }
 0x728   : > { %3411 = vmatpush3.msra.mxu0 %v1075_v59 }
 0x729   : > { %3413 = vmatmul.mubr.msk.f32.vlgmr.msra.gmra.mrb[12].mxu0 %vm271_vm3, %v3943_v14  ;;  %3420 = vmatprep.subr.mxu0 %v3745_v0 }
 0x72a   : > { %3422 = vmatprep.mubr.msk.f32.mxu0 %vm3746_vm0, %v3745_v0 }
 0x7fc   : > { %v1142_v60 = vpop.f32.mrb[12].mxu0 }
 0x7fd   : > { %v1143_v61 = vadd.f32 %v1142_v60, %v3950_v15  ;;  %v3414_v62 = vpop.f32.mrb[13].mxu0 }
 0x7ff   : > { %v1146_v63 = vmax.f32 %v1143_v61, 0.0 }
 0x801   : > { %3416 = vmatpush3.msra.mxu1 %v1146_v63 }
 0x802   : > { %3418 = vmatmul.mubr.msk.f32.vlgmr.msra.gmra.mrb[12].mxu1 %vm271_vm3, %v3953_v20  ;;  %3425 = vmatprep.subr.mxu1 %v3745_v0 }
 0x803   : > { %3426 = vmatpush3.msk.msra.mxu1 %vm196_vm1, %v3223_v1  ;;  %3427 = vmatprep.mubr.msk.f32.mxu1 %vm3746_vm0, %v3745_v0 }
 0x804   : > { %3435 = vmatprep.subr.mxu1 %v3745_v0 }
 0x806   : > { %3428 = vmatmul.mubr.msk.f32.vlgmr.msra.gmra.mrb[14].mxu1 %vm192_vm2, %v3922_v2 }
 0x807   : > { %3437 = vmatprep.mubr.msk.f32.mxu1 %vm3746_vm0, %v3745_v0 }
 0x8d5   : > { %v1213_v4 = vpop.f32.mrb[12].mxu1 }
 0x8d6   : > { %v1214_v5 = vadd.f32 %v1213_v4, %v3967_v22  ;;  %v3419_v6 = vpop.f32.mrb[13].mxu1 }
 0x8d8   : > { %v1217_v7 = vmax.f32 %v1214_v5, 0.0 }
 0x8d9   : > { %v1361_v10 = vpop.f32.mrb[14].mxu1 }
 0x8da   : > { %v1362_v11 = vadd.f32 %v1361_v10, %v3930_v3  ;;  %3421 = vmatpush3.msra.mxu0 %v1217_v7  ;;  %v3429_v12 = vpop.f32.mrb[15].mxu1 }
 0x8db   : > { %3423 = vmatmul.mubr.msk.f32.vlgmr.msra.gmra.mrb[14].mxu0 %vm271_vm3, %v3970_v27  ;;  %3430 = vmatprep.subr.mxu0 %v3745_v0  ;;  %v3247_v12 = vld [vmem:[%s3905_s29 + $0x18] sm:$0x7] }
 0x8dc   : > { %v1365_v13 = vmax.f32 %v1362_v11, 0.0  ;;  %3432 = vmatprep.mubr.msk.f32.mxu0 %vm3746_vm0, %v3745_v0 }
 0x8de   : > { %3431 = vmatpush3.msra.mxu0 %v1365_v13 }
 0x8df   : > { %3433 = vmatmul.mubr.msk.f32.vlgmr.msra.gmra.mrb[16].mxu0 %vm271_vm3, %v3933_v8  ;;  %3440 = vmatprep.subr.mxu0 %v3745_v0 }
 0x8e0   : > { %3442 = vmatprep.mubr.msk.f32.mxu0 %vm3746_vm0, %v3745_v0 }
 0x9ae   : > { %v1284_v16 = vpop.f32.mrb[14].mxu0 }
 0x9af   : > { %v1285_v17 = vadd.f32 %v1284_v16, %v3983_v32  ;;  %v3424_v18 = vpop.f32.mrb[15].mxu0 }
 0x9b1   : > { %3222 = vst [vmem:[%s3988_s15 + $0x8] sm:$0xf] %v1285_v17 }
 0x9b2   : > { %v1432_v19 = vpop.f32.mrb[16].mxu0 }
 0x9b3   : > { %v1433_v21 = vadd.f32 %v1432_v19, %v3940_v9  ;;  %v3434_v23 = vpop.f32.mrb[17].mxu0 }
 0x9b5   : > { %v1436_v24 = vmax.f32 %v1433_v21, 0.0 }
 0x9b7   : > { %3436 = vmatpush3.msra.mxu1 %v1436_v24 }
 0x9b8   : > { %3438 = vmatmul.mubr.msk.f32.vlgmr.msra.gmra.mrb[16].mxu1 %vm271_vm3, %v3943_v14  ;;  %3445 = vmatprep.subr.mxu1 %v3745_v0 }
 0x9b9   : > { %3447 = vmatprep.mubr.msk.f32.mxu1 %vm3746_vm0, %v3745_v0 }
 0xa8b   : > { %v1503_v25 = vpop.f32.mrb[16].mxu1 }
 0xa8c   : > { %v1504_v26 = vadd.f32 %v1503_v25, %v3950_v15  ;;  %v3439_v28 = vpop.f32.mrb[17].mxu1 }
 0xa8e   : > { %v1507_v29 = vmax.f32 %v1504_v26, 0.0 }
 0xa90   : > { %3441 = vmatpush3.msra.mxu0 %v1507_v29 }
 0xa91   : > { %3443 = vmatmul.mubr.msk.f32.vlgmr.msra.gmra.mrb[18].mxu0 %vm271_vm3, %v3953_v20  ;;  %3450 = vmatprep.subr.mxu0 %v3745_v0 }
 0xa92   : > { %3451 = vmatpush3.msk.msra.mxu0 %vm196_vm1, %v3231_v30  ;;  %3452 = vmatprep.mubr.msk.f32.mxu0 %vm3746_vm0, %v3745_v0 }
 0xa93   : > { %3460 = vmatprep.subr.mxu0 %v3745_v0 }
 0xa95   : > { %3453 = vmatmul.mubr.msk.f32.vlgmr.msra.gmra.mrb[20].mxu0 %vm192_vm2, %v3922_v2 }
 0xa96   : > { %3462 = vmatprep.mubr.msk.f32.mxu0 %vm3746_vm0, %v3745_v0 }
 0xb64   : > { %v1574_v31 = vpop.f32.mrb[18].mxu0 }
 0xb65   : > { %v1575_v33 = vadd.f32 %v1574_v31, %v3967_v22  ;;  %v3444_v34 = vpop.f32.mrb[19].mxu0 }
 0xb67   : > { %v1578_v35 = vmax.f32 %v1575_v33, 0.0 }
 0xb68   : > { %v1722_v36 = vpop.f32.mrb[20].mxu0 }
 0xb69   : > { %v1723_v37 = vadd.f32 %v1722_v36, %v3930_v3  ;;  %3446 = vmatpush3.msra.mxu1 %v1578_v35  ;;  %v3454_v38 = vpop.f32.mrb[21].mxu0 }
 0xb6a   : > { %3448 = vmatmul.mubr.msk.f32.vlgmr.msra.gmra.mrb[18].mxu1 %vm271_vm3, %v3970_v27  ;;  %3455 = vmatprep.subr.mxu1 %v3745_v0  ;;  %v3255_v38 = vld [vmem:[%s3905_s29 + $0x1c] sm:$0x7] }
 0xb6b   : > { %v1726_v39 = vmax.f32 %v1723_v37, 0.0  ;;  %3457 = vmatprep.mubr.msk.f32.mxu1 %vm3746_vm0, %v3745_v0 }
 0xb6d   : > { %3456 = vmatpush3.msra.mxu1 %v1726_v39 }
 0xb6e   : > { %3458 = vmatmul.mubr.msk.f32.vlgmr.msra.gmra.mrb[20].mxu1 %vm271_vm3, %v3933_v8  ;;  %3465 = vmatprep.subr.mxu1 %v3745_v0 }
 0xb6f   : > { %3467 = vmatprep.mubr.msk.f32.mxu1 %vm3746_vm0, %v3745_v0 }
 0xc3d   : > { %v1645_v40 = vpop.f32.mrb[18].mxu1 }
 0xc3e   : > { %v1646_v41 = vadd.f32 %v1645_v40, %v3983_v32  ;;  %v3449_v42 = vpop.f32.mrb[19].mxu1 }
 0xc40   : > { %3230 = vst [vmem:[%s3988_s15 + $0xc] sm:$0xf] %v1646_v41 }
 0xc41   : > { %v1793_v43 = vpop.f32.mrb[20].mxu1 }
 0xc42   : > { %v1794_v44 = vadd.f32 %v1793_v43, %v3940_v9  ;;  %v3459_v45 = vpop.f32.mrb[21].mxu1 }
 0xc44   : > { %v1797_v46 = vmax.f32 %v1794_v44, 0.0 }
 0xc46   : > { %3461 = vmatpush3.msra.mxu0 %v1797_v46 }
 0xc47   : > { %3463 = vmatmul.mubr.msk.f32.vlgmr.msra.gmra.mrb[22].mxu0 %vm271_vm3, %v3943_v14  ;;  %3470 = vmatprep.subr.mxu0 %v3745_v0 }
 0xc48   : > { %3472 = vmatprep.mubr.msk.f32.mxu0 %vm3746_vm0, %v3745_v0 }
 0xd1a   : > { %v1864_v47 = vpop.f32.mrb[22].mxu0 }
 0xd1b   : > { %v1865_v48 = vadd.f32 %v1864_v47, %v3950_v15  ;;  %v3464_v49 = vpop.f32.mrb[23].mxu0 }
 0xd1d   : > { %v1868_v50 = vmax.f32 %v1865_v48, 0.0 }
 0xd1f   : > { %3466 = vmatpush3.msra.mxu1 %v1868_v50 }
 0xd20   : > { %3468 = vmatmul.mubr.msk.f32.vlgmr.msra.gmra.mrb[22].mxu1 %vm271_vm3, %v3953_v20  ;;  %3475 = vmatprep.subr.mxu1 %v3745_v0 }
 0xd21   : > { %3476 = vmatpush3.msk.msra.mxu1 %vm196_vm1, %v3239_v51  ;;  %3477 = vmatprep.mubr.msk.f32.mxu1 %vm3746_vm0, %v3745_v0 }
 0xd22   : > { %3485 = vmatprep.subr.mxu1 %v3745_v0 }
 0xd24   : > { %3478 = vmatmul.mubr.msk.f32.vlgmr.msra.gmra.mrb[24].mxu1 %vm192_vm2, %v3922_v2 }
 0xd25   : > { %3487 = vmatprep.mubr.msk.f32.mxu1 %vm3746_vm0, %v3745_v0 }
 0xdf3   : > { %v1935_v52 = vpop.f32.mrb[22].mxu1 }
 0xdf4   : > { %v1936_v53 = vadd.f32 %v1935_v52, %v3967_v22  ;;  %v3469_v54 = vpop.f32.mrb[23].mxu1 }
 0xdf6   : > { %v1939_v55 = vmax.f32 %v1936_v53, 0.0 }
 0xdf7   : > { %v2083_v56 = vpop.f32.mrb[24].mxu1 }
 0xdf8   : > { %v2084_v57 = vadd.f32 %v2083_v56, %v3930_v3  ;;  %3471 = vmatpush3.msra.mxu0 %v1939_v55  ;;  %v3479_v58 = vpop.f32.mrb[25].mxu1 }
 0xdf9   : > { %3473 = vmatmul.mubr.msk.f32.vlgmr.msra.gmra.mrb[24].mxu0 %vm271_vm3, %v3970_v27  ;;  %3480 = vmatprep.subr.mxu0 %v3745_v0 }
 0xdfa   : > { %v2087_v59 = vmax.f32 %v2084_v57, 0.0  ;;  %3482 = vmatprep.mubr.msk.f32.mxu0 %vm3746_vm0, %v3745_v0 }
 0xdfc   : > { %3481 = vmatpush3.msra.mxu0 %v2087_v59 }
 0xdfd   : > { %3483 = vmatmul.mubr.msk.f32.vlgmr.msra.gmra.mrb[26].mxu0 %vm271_vm3, %v3933_v8  ;;  %3490 = vmatprep.subr.mxu0 %v3745_v0 }
 0xdfe   : > { %3492 = vmatprep.mubr.msk.f32.mxu0 %vm3746_vm0, %v3745_v0 }
 0xecc   : > { %v2006_v60 = vpop.f32.mrb[24].mxu0 }
 0xecd   : > { %v2007_v61 = vadd.f32 %v2006_v60, %v3983_v32  ;;  %v3474_v62 = vpop.f32.mrb[25].mxu0 }
 0xecf   : > { %3238 = vst [vmem:[%s3988_s15 + $0x10] sm:$0xf] %v2007_v61 }
 0xed0   : > { %v2154_v63 = vpop.f32.mrb[26].mxu0 }
 0xed1   : > { %v2155_v1 = vadd.f32 %v2154_v63, %v3940_v9  ;;  %v3484_v4 = vpop.f32.mrb[27].mxu0 }
 0xed3   : > { %v2158_v5 = vmax.f32 %v2155_v1, 0.0 }
 0xed5   : > { %3486 = vmatpush3.msra.mxu1 %v2158_v5 }
 0xed6   : > { %3488 = vmatmul.mubr.msk.f32.vlgmr.msra.gmra.mrb[26].mxu1 %vm271_vm3, %v3943_v14  ;;  %3495 = vmatprep.subr.mxu1 %v3745_v0 }
 0xed7   : > { %3497 = vmatprep.mubr.msk.f32.mxu1 %vm3746_vm0, %v3745_v0 }
 0xfa9   : > { %v2225_v6 = vpop.f32.mrb[26].mxu1 }
 0xfaa   : > { %v2226_v7 = vadd.f32 %v2225_v6, %v3950_v15  ;;  %v3489_v10 = vpop.f32.mrb[27].mxu1 }
 0xfac   : > { %v2229_v11 = vmax.f32 %v2226_v7, 0.0 }
 0xfae   : > { %3491 = vmatpush3.msra.mxu0 %v2229_v11 }
 0xfaf   : > { %3493 = vmatmul.mubr.msk.f32.vlgmr.msra.gmra.mrb[28].mxu0 %vm271_vm3, %v3953_v20  ;;  %3500 = vmatprep.subr.mxu0 %v3745_v0 }
 0xfb0   : > { %3501 = vmatpush3.msk.msra.mxu0 %vm196_vm1, %v3247_v12  ;;  %3502 = vmatprep.mubr.msk.f32.mxu0 %vm3746_vm0, %v3745_v0 }
 0xfb1   : > { %3510 = vmatprep.subr.mxu0 %v3745_v0 }
 0xfb3   : > { %3503 = vmatmul.mubr.msk.f32.vlgmr.msra.gmra.mrb[30].mxu0 %vm192_vm2, %v3922_v2 }
 0xfb4   : > { %3512 = vmatprep.mubr.msk.f32.mxu0 %vm3746_vm0, %v3745_v0 }
0x1082   : > { %v2296_v13 = vpop.f32.mrb[28].mxu0 }
0x1083   : > { %v2297_v16 = vadd.f32 %v2296_v13, %v3967_v22  ;;  %v3494_v17 = vpop.f32.mrb[29].mxu0 }
0x1085   : > { %v2300_v18 = vmax.f32 %v2297_v16, 0.0 }
0x1086   : > { %v2444_v19 = vpop.f32.mrb[30].mxu0 }
0x1087   : > { %v2445_v21 = vadd.f32 %v2444_v19, %v3930_v3  ;;  %3496 = vmatpush3.msra.mxu1 %v2300_v18  ;;  %v3504_v23 = vpop.f32.mrb[31].mxu0 }
0x1088   : > { %3498 = vmatmul.mubr.msk.f32.vlgmr.msra.gmra.mrb[28].mxu1 %vm271_vm3, %v3970_v27  ;;  %3505 = vmatprep.subr.mxu1 %v3745_v0 }
0x1089   : > { %v2448_v24 = vmax.f32 %v2445_v21, 0.0  ;;  %3507 = vmatprep.mubr.msk.f32.mxu1 %vm3746_vm0, %v3745_v0 }
0x108b   : > { %3506 = vmatpush3.msra.mxu1 %v2448_v24 }
0x108c   : > { %3508 = vmatmul.mubr.msk.f32.vlgmr.msra.gmra.mrb[30].mxu1 %vm271_vm3, %v3933_v8  ;;  %3515 = vmatprep.subr.mxu1 %v3745_v0 }
0x108d   : > { %3517 = vmatprep.mubr.msk.f32.mxu1 %vm3746_vm0, %v3745_v0 }
0x115b   : > { %v2367_v25 = vpop.f32.mrb[28].mxu1 }
0x115c   : > { %v2368_v26 = vadd.f32 %v2367_v25, %v3983_v32  ;;  %v3499_v28 = vpop.f32.mrb[29].mxu1 }
0x115e   : > { %3246 = vst [vmem:[%s3988_s15 + $0x14] sm:$0xf] %v2368_v26 }
0x115f   : > { %v2515_v29 = vpop.f32.mrb[30].mxu1 }
0x1160   : > { %v2516_v30 = vadd.f32 %v2515_v29, %v3940_v9  ;;  %v3509_v31 = vpop.f32.mrb[31].mxu1 }
0x1162   : > { %v2519_v33 = vmax.f32 %v2516_v30, 0.0 }
0x1164   : > { %3511 = vmatpush3.msra.mxu0 %v2519_v33 }
0x1165   : > { %3513 = vmatmul.mubr.msk.f32.vlgmr.msra.gmra.mrb[32].mxu0 %vm271_vm3, %v3943_v14  ;;  %3520 = vmatprep.subr.mxu0 %v3745_v0 }
0x1166   : > { %3522 = vmatprep.mubr.msk.f32.mxu0 %vm3746_vm0, %v3745_v0 }
0x1238   : > { %v2586_v34 = vpop.f32.mrb[32].mxu0 }
0x1239   : > { %v2587_v35 = vadd.f32 %v2586_v34, %v3950_v15  ;;  %v3514_v36 = vpop.f32.mrb[33].mxu0 }
0x123b   : > { %v2590_v37 = vmax.f32 %v2587_v35, 0.0 }
0x123d   : > { %3516 = vmatpush3.msra.mxu1 %v2590_v37 }
0x123e   : > { %3518 = vmatmul.mubr.msk.f32.vlgmr.msra.gmra.mrb[32].mxu1 %vm271_vm3, %v3953_v20  ;;  %3525 = vmatprep.subr.mxu1 %v3745_v0 }
0x123f   : > { %3526 = vmatpush3.msk.msra.mxu1 %vm196_vm1, %v3255_v38  ;;  %3527 = vmatprep.mubr.msk.f32.mxu1 %vm3746_vm0, %v3745_v0 }
0x1240   : > { %3535 = vmatprep.subr.mxu1 %v3745_v0 }
0x1242   : > { %3528 = vmatmul.mubr.msk.f32.vlgmr.msra.gmra.mrb[34].mxu1 %vm192_vm2, %v3922_v2 }
0x1243   : > { %3537 = vmatprep.mubr.msk.f32.mxu1 %vm3746_vm0, %v3745_v0 }
0x1311   : > { %v2657_v39 = vpop.f32.mrb[32].mxu1 }
0x1312   : > { %v2658_v40 = vadd.f32 %v2657_v39, %v3967_v22  ;;  %v3519_v41 = vpop.f32.mrb[33].mxu1 }
0x1314   : > { %v2661_v42 = vmax.f32 %v2658_v40, 0.0 }
0x1315   : > { %v2805_v43 = vpop.f32.mrb[34].mxu1 }
0x1316   : > { %v2806_v44 = vadd.f32 %v2805_v43, %v3930_v3  ;;  %3521 = vmatpush3.msra.mxu0 %v2661_v42  ;;  %v3529_v45 = vpop.f32.mrb[35].mxu1 }
0x1317   : > { %3523 = vmatmul.mubr.msk.f32.vlgmr.msra.gmra.mrb[34].mxu0 %vm271_vm3, %v3970_v27  ;;  %3530 = vmatprep.subr.mxu0 %v3745_v0 }
0x1318   : > { %v2809_v2 = vmax.f32 %v2806_v44, 0.0  ;;  %3532 = vmatprep.mubr.msk.f32.mxu0 %vm3746_vm0, %v3745_v0 }
0x131a   : > { %3531 = vmatpush3.msra.mxu0 %v2809_v2 }
0x131b   : > { %3533 = vmatmul.mubr.msk.f32.vlgmr.msra.gmra.mrb[36].mxu0 %vm271_vm3, %v3933_v8  ;;  %3540 = vmatprep.subr.mxu0 %v3745_v0 }
0x131c   : > { %3542 = vmatprep.mubr.msk.f32.mxu0 %vm3746_vm0, %v3745_v0 }
0x13ea   : > { %v2728_v3 = vpop.f32.mrb[34].mxu0 }
0x13eb   : > { %v2729_v46 = vadd.f32 %v2728_v3, %v3983_v32  ;;  %v3524_v47 = vpop.f32.mrb[35].mxu0 }
0x13ed   : > { %3254 = vst [vmem:[%s3988_s15 + $0x18] sm:$0xf] %v2729_v46 }
0x13ee   : > { %v2876_v48 = vpop.f32.mrb[36].mxu0 }
0x13ef   : > { %v2877_v49 = vadd.f32 %v2876_v48, %v3940_v9  ;;  %v3534_v50 = vpop.f32.mrb[37].mxu0 }
0x13f1   : > { %v2880_v51 = vmax.f32 %v2877_v49, 0.0 }
0x13f3   : > { %3536 = vmatpush3.msra.mxu1 %v2880_v51 }
0x13f4   : > { %3538 = vmatmul.mubr.msk.f32.vlgmr.msra.gmra.mrb[36].mxu1 %vm271_vm3, %v3943_v14  ;;  %3545 = vmatprep.subr.mxu1 %v3745_v0 }
0x13f5   : > { %3547 = vmatprep.mubr.msk.f32.mxu1 %vm3746_vm0, %v3745_v0 }
0x14c7   : > { %v2947_v8 = vpop.f32.mrb[36].mxu1 }
0x14c8   : > { %v2948_v52 = vadd.f32 %v2947_v8, %v3950_v15  ;;  %v3539_v53 = vpop.f32.mrb[37].mxu1 }
0x14ca   : > { %v2951_v54 = vmax.f32 %v2948_v52, 0.0 }
0x14cc   : > { %3541 = vmatpush3.msra.mxu0 %v2951_v54 }
0x14cd   : > { %3543 = vmatmul.mubr.msk.f32.vlgmr.msra.gmra.mrb[38].mxu0 %vm271_vm3, %v3953_v20 }
0x15a0   : > { %v3018_v9 = vpop.f32.mrb[38].mxu0 }
0x15a1   : > { %v3019_v14 = vadd.f32 %v3018_v9, %v3967_v22  ;;  %v3544_v55 = vpop.f32.mrb[39].mxu0 }
0x15a3   : > { %v3022_v56 = vmax.f32 %v3019_v14, 0.0 }
0x15a5   : > { %3546 = vmatpush3.msra.mxu1 %v3022_v56 }
0x15a6   : > { %3548 = vmatmul.mubr.msk.f32.vlgmr.msra.gmra.mrb[38].mxu1 %vm271_vm3, %v3970_v27 }
0x1679   : > { %v3089_v0 = vpop.f32.mrb[38].mxu1 }
0x167a   : > { %v3090_v15 = vadd.f32 %v3089_v0, %v3983_v32  ;;  %v3549_v57 = vpop.f32.mrb[39].mxu1 }
0x167c   : > { %3262 = vst [vmem:[%s3988_s15 + $0x1c] sm:$0xf] %v3090_v15 }
0x167d   : > { %3682 = shalt.err (!%p3679_p7)
}
0x167e   : > { %s3683_s6 = scalar_lea.hbm %s4207_s28, 512  ;;  %s3687_s24 = scalar_lea.hbm %s4254_s2, 1024 }
0x167f   : > { %p3684_p9 = scmp.ne.s32.totalorder %s4207_s28, %s3683_s6  ;;  %p3688_p0 = scmp.lt.u32.totalorder %s4207_s28, %s4254_s2 }
0x1680   : > { %p3689_p11 = scmp.lt.u32.totalorder %s3687_s24, %s3683_s6  ;;  %p3691_p4 = scmp.lt.u32.totalorder %s3683_s6, %s4207_s28 }
0x1681   : > { %p3685_p2 = pnand %p3684_p9, %p3854_p12 }
0x1682   : > { %p3690_p1 = por %p3689_p11, %p3688_p0 }
0x1683   : > { %p3686_p5 = pneg %p3685_p2 }
0x1684   : > { %p3692_p6 = por %p3691_p4, %p3690_p1 }
0x1686   : > { %p3693_p8 = pnand %p3692_p6, %p3686_p5 }
0x1688   : > { %3696 = shalt.err (!%p3693_p8)
}
0x1689   : > { %3556 = dma.vmem_to_hbm [thread:$0]  (%p3854_p12), %s4209_s27, 512, %s4207_s28, %s3096_s30  }
0x168a PF: > { %s3122_s26 = sand.u32 1, %s3727_s9   ;;  %p4269_p10 = scmp.ne.s32.totalorder %s4259_s16, 0 }
0x168b   : > { %p4270_p13 = scmp.ge.s32.totalorder %s3739_s12, 2  ;;  %s3123_s19 = scalar_lea.sflag [#allocation4], %s3122_s26 }
0x168d   : > { %p3567_p3 = pnand %p4270_p13, %p4269_p10 }
0x168f   : > { %3722 = dma.done.wait (!%p3567_p3), %s3123_s19, 512  }
0x1690   : > { %3724 = vsyncadd (!%p3567_p3), %s3123_s19, 4294966784  ;;  %p16_p7 = scmp.ge.s32.totalorder %s3819_s21, 4   ;;  %s4271_s9 = smov %s3731_s10 }
0x1691   : > { %s4272_s10 = smov %s3735_s11  ;;  %s4273_s11 = smov %s3850_s8 }
0x1692   : > { %s4274_s12 = smov %s3819_s21  ;;  %18 = sbr.rel (!%p16_p7) target bundleno = 6 (0x6), region = 95 }
0x1699   :  { %3128 = vsyncpa [#allocation3], 1 }
0x169a   :  { %3130 = vsyncpa [#allocation3 + $0x1], 1 }
0x169b   :  { %3131 = vsyncpa [#allocation6], 1 }
0x169c   :  { %3132 = vsyncpa [#allocation4], 1 }
0x169d   :  { %3134 = vsyncpa [#allocation4 + $0x1], 1 }

</bundles_post_ra>
